<compile_context>
chip_gen: v5e
topology: v5e:2x2
jax: 0.10.0
libtpu: 0.0.40
codegen_flags: <defaults>
</compile_context>

<pallas_src>
import math
from functools import partial

import numpy as np
import jax
import jax.numpy as jnp
from jax.experimental import pallas as pl
from jax.experimental.pallas import tpu as pltpu


# ----------------------------------------------------------------------------
# Static interpolation matrices (compile-time constants, plain numpy glue)
# ----------------------------------------------------------------------------
def adaptive_pool_matrix(out_size: int, in_size: int) -> np.ndarray:
    """Row-stochastic M (out, in) s.t. M @ v == AdaptiveAvgPool1d(v, out)."""
    M = np.zeros((out_size, in_size), np.float32)
    for i in range(out_size):
        start = (i * in_size) // out_size
        end = -((-(i + 1) * in_size) // out_size)  # ceil((i+1)*in/out)
        M[i, start:end] = 1.0 / float(end - start)
    return M


def bilinear_matrix(out_size: int, in_size: int) -> np.ndarray:
    """M (out, in) s.t. M @ v == 1D bilinear upsample, align_corners=True
    (matches the torch module's F.interpolate(..., align_corners=True))."""
    M = np.zeros((out_size, in_size), np.float32)
    if in_size == 1:
        M[:, 0] = 1.0
        return M
    for h in range(out_size):
        src = h * (in_size - 1) / (out_size - 1)
        lo = min(int(math.floor(src)), in_size - 1)
        hi = min(lo + 1, in_size - 1)
        frac = src - lo
        M[h, lo] += 1.0 - frac
        M[h, hi] += frac
    return M


def _round_up(x: int, m: int) -> int:
    return ((x + m - 1) // m) * m


# ----------------------------------------------------------------------------
# VMEM budgeting (explicit vmem_limit_bytes per call)
# ----------------------------------------------------------------------------
def _vmem_block_bytes(shape, dtype):
    pad = list(shape)
    pad[-1] = _round_up(pad[-1], 128)           # lane padding
    if len(pad) >= 2:
        pad[-2] = _round_up(pad[-2], 8)         # sublane padding
    return int(np.prod(pad)) * np.dtype(dtype).itemsize


def _vmem_limit_bytes(blocks):
    """Scoped-VMEM request: double-buffered padded block set with 2x headroom."""
    est = sum(2 * _vmem_block_bytes(s, d) for s, d in blocks)
    return int(min(64 << 20, max(16 << 20, 2 * est)))


# ----------------------------------------------------------------------------
# Pallas kernels
# ----------------------------------------------------------------------------
def _make_pool_kernel(hw_valid: int, lane_tile: int, needs_mask: bool):
    """Pass 1a (batch folded into M, HW lane-tiled reduction):
         pooled[m, :] += x[m, tile_k] @ PT_all[tile_k, :]
       The f32 output block is the accumulator (same block index across k)."""
    def kernel(x_ref, pt_ref, pooled_ref):
        k = pl.program_id(1)

        @pl.when(k == 0)
        def _():
            pooled_ref[...] = jnp.zeros_like(pooled_ref)

        xt = x_ref[...]                                   # f32 tile from HBM
        if needs_mask:
            # Ragged H*W tail: zero the out-of-range lanes so the reduction only
            # sees valid pixels (PT_all's padded rows are zero on the host side).
            col = k * lane_tile + jax.lax.broadcasted_iota(jnp.int32, xt.shape, 1)
            xt = jnp.where(col < hw_valid, xt, 0.0)
        pooled_ref[...] += jnp.dot(xt.astype(jnp.bfloat16), pt_ref[...],
                                   preferred_element_type=jnp.float32)
    return kernel


def _epilogue_kernel(pooled_ref, wf_ref, bias_ref, mask_ref, wlb_ref, z_ref):
    """Pass 1b (per sample, tiny (C_in, S) activations):
         Y = relu(Wf_stack @ pooled + bias) * block_diag_mask
         Z = WL_branch @ Y            (lastConv applied BEFORE the upsample)"""
    pooled_bf = pooled_ref[...].astype(jnp.bfloat16)
    y = jnp.dot(wf_ref[...], pooled_bf, preferred_element_type=jnp.float32)
    y = jnp.maximum(y + bias_ref[...], 0.0) * mask_ref[...]
    z = jnp.dot(wlb_ref[...], y.astype(jnp.bfloat16),
                preferred_element_type=jnp.float32)
    z_ref[...] = z.astype(z_ref.dtype)


def _apply_kernel(z_ref, wli_ref, x_ref, ut_ref, out_ref):
    """Pass 2 (per sample, per HW lane tile):
         out_tile = WL_identity @ x_tile + Z @ UT_all_tile   (f32 accumulation)"""
    xb = x_ref[...].astype(jnp.bfloat16)                  # in-kernel f32 -> bf16
    ident = jnp.dot(wli_ref[...], xb, preferred_element_type=jnp.float32)
    up = jnp.dot(z_ref[...], ut_ref[...], preferred_element_type=jnp.float32)
    out_ref[...] = (ident + up).astype(out_ref.dtype)


# ----------------------------------------------------------------------------
# Host-side parameter packing (pool/upsample matrices, BN folding, bf16 casts)
# ----------------------------------------------------------------------------
def pack_ppm_operands(w_last, branch_wb, bins, H, W, lane_tile=512):
    assert lane_tile % 128 == 0
    C_in = w_last.shape[0]
    C_out = branch_wb[0][0].shape[0]
    B = len(bins)
    BCo = B * C_out
    HW = H * W

    # lane (H*W) tiling: T is a multiple of 128 (raise lane_tile to 1024+ on
    # v5e/v6e if VMEM allows; ~512 is comfortable on v7x with this structure)
    if HW <= lane_tile:
        HWp = _round_up(HW, 128)
        T = HWp
    else:
        T = lane_tile
        HWp = _round_up(HW, T)

    pts, uts = [], []
    S = sum(b * b for b in bins)
    mask = np.zeros((BCo, S), np.float32)
    col = 0
    for bi, bin_sz in enumerate(bins):
        bin2 = bin_sz * bin_sz
        Ph = adaptive_pool_matrix(bin_sz, H)
        Pw = adaptive_pool_matrix(bin_sz, W)
        pts.append(np.kron(Ph, Pw).T)                    # (HW, bin2)
        Uh = bilinear_matrix(H, bin_sz)
        Uw = bilinear_matrix(W, bin_sz)
        uts.append(np.kron(Uh, Uw).T)                    # (bin2, HW)
        mask[bi * C_out:(bi + 1) * C_out, col:col + bin2] = 1.0
        col += bin2

    # Zero-pad the static pool/upsample operands to the padded lane extent so the
    # last lane tile never reads nondeterministic data (x itself is NOT padded;
    # its ragged tail is masked in-kernel).
    PT_all = np.pad(np.concatenate(pts, axis=1), ((0, HWp - HW), (0, 0)))   # (HWp, S)
    UT_all = np.pad(np.concatenate(uts, axis=0), ((0, 0), (0, HWp - HW)))   # (S, HWp)

    Wf_stack = jnp.concatenate([wf for wf, _ in branch_wb], axis=0)     # (BCo, C_in)
    bias_stack = jnp.concatenate([bf for _, bf in branch_wb], axis=0)   # (BCo, 1)

    return dict(
        PT_all=jnp.asarray(PT_all, jnp.bfloat16),
        UT_all=jnp.asarray(UT_all, jnp.bfloat16),
        Wf_stack=Wf_stack.astype(jnp.bfloat16),
        bias_stack=bias_stack.astype(jnp.float32),
        mask=jnp.asarray(mask, jnp.float32),
        WL_id=w_last[:, :C_in].astype(jnp.bfloat16),               # pre-split on host
        WL_br=w_last[:, C_in:C_in + BCo].astype(jnp.bfloat16),     # lane-aligned tiles
        geom=dict(C_in=C_in, C_out=C_out, B=B, BCo=BCo, S=S, H=H, W=W,
                  HW=HW, HWp=HWp, T=T, needs_mask=(HWp != HW)),
    )


# ----------------------------------------------------------------------------
# Forward pass (three pallas_calls: stream-pool, tiny epilogue, stream-apply)
# ----------------------------------------------------------------------------
def ppm_forward(x, ops, out_dtype=jnp.bfloat16):
    g = ops["geom"]
    C_in, BCo, S = g["C_in"], g["BCo"], g["S"]
    H, W, HW, HWp, T = g["H"], g["W"], g["HW"], g["HWp"], g["T"]
    K = HWp // T
    N = x.shape[0]
    M = N * C_in
    tile_M = M if M <= 512 else 512

    # Free, contiguity-preserving views of x (f32 stays in HBM; bf16 cast in-kernel).
    x2d = x.reshape(M, HW)
    x3d = x.reshape(N, C_in, HW)

    # ---- pass 1a: pooled = x @ PT_all  (batch folded into M, HW-tiled reduction) --
    blocks_a = [((tile_M, T), jnp.float32), ((T, S), jnp.bfloat16),
                ((tile_M, S), jnp.float32)]
    pooled = pl.pallas_call(
        _make_pool_kernel(HW, T, g["needs_mask"]),
        out_shape=jax.ShapeDtypeStruct((M, S), jnp.float32),
        grid=(pl.cdiv(M, tile_M), K),
        in_specs=[pl.BlockSpec((tile_M, T), lambda m, k: (m, k)),   # x tile (f32)
                  pl.BlockSpec((T, S), lambda m, k: (k, 0))],       # PT_all tile
        out_specs=pl.BlockSpec((tile_M, S), lambda m, k: (m, 0)),   # resident acc
        compiler_params=pltpu.CompilerParams(
            dimension_semantics=("parallel", "arbitrary"),
            vmem_limit_bytes=_vmem_limit_bytes(blocks_a)),
        cost_estimate=pl.CostEstimate(
            flops=2 * M * HWp * S, transcendentals=0,
            bytes_accessed=M * HW * 4 + ops["PT_all"].size * 2 + M * S * 4),
    )(x2d, ops["PT_all"])

    # ---- pass 1b: stacked 1x1conv(+BN)+ReLU + branch half of lastConv (tiny) ------
    pooled3 = pooled.reshape(N, C_in, S)
    blocks_b = [((C_in, S), jnp.float32), ((BCo, C_in), jnp.bfloat16),
                ((BCo, 1), jnp.float32), ((BCo, S), jnp.float32),
                ((C_in, BCo), jnp.bfloat16), ((C_in, S), jnp.bfloat16)]
    z = pl.pallas_call(
        _epilogue_kernel,
        out_shape=jax.ShapeDtypeStruct((N, C_in, S), jnp.bfloat16),
        grid=(N,),
        in_specs=[pl.BlockSpec((None, C_in, S), lambda n: (n, 0, 0)),   # pooled
                  pl.BlockSpec((BCo, C_in), lambda n: (0, 0)),          # Wf_stack
                  pl.BlockSpec((BCo, 1), lambda n: (0, 0)),             # bias_stack
                  pl.BlockSpec((BCo, S), lambda n: (0, 0)),             # block-diag mask
                  pl.BlockSpec((C_in, BCo), lambda n: (0, 0))],         # WL_branch
        out_specs=pl.BlockSpec((None, C_in, S), lambda n: (n, 0, 0)),
        compiler_params=pltpu.CompilerParams(
            dimension_semantics=("parallel",),
            vmem_limit_bytes=_vmem_limit_bytes(blocks_b)),
        cost_estimate=pl.CostEstimate(
            flops=4 * N * S * BCo * C_in, transcendentals=0,
            bytes_accessed=(M * S * 4 + ops["Wf_stack"].size * 2
                            + ops["bias_stack"].size * 4 + ops["mask"].size * 4
                            + ops["WL_br"].size * 2 + N * C_in * S * 2)),
    )(pooled3, ops["Wf_stack"], ops["bias_stack"], ops["mask"], ops["WL_br"])

    # ---- pass 2: identity lastConv + fused upsample, lane-tiled over H*W ----------
    blocks_c = [((C_in, S), jnp.bfloat16), ((C_in, C_in), jnp.bfloat16),
                ((C_in, T), jnp.float32), ((S, T), jnp.bfloat16),
                ((C_in, T), out_dtype)]
    out = pl.pallas_call(
        _apply_kernel,
        out_shape=jax.ShapeDtypeStruct((N, C_in, HW), out_dtype),      # bf16, exact HW
        grid=(N, K),
        in_specs=[pl.BlockSpec((None, C_in, S), lambda n, k: (n, 0, 0)),  # Z
                  pl.BlockSpec((C_in, C_in), lambda n, k: (0, 0)),        # WL_identity
                  pl.BlockSpec((None, C_in, T), lambda n, k: (n, 0, k)),  # x tile (f32)
                  pl.BlockSpec((S, T), lambda n, k: (0, k))],             # UT_all tile
        out_specs=pl.BlockSpec((None, C_in, T), lambda n, k: (n, 0, k)),
        compiler_params=pltpu.CompilerParams(
            dimension_semantics=("parallel", "parallel"),
            vmem_limit_bytes=_vmem_limit_bytes(blocks_c)),
        cost_estimate=pl.CostEstimate(
            flops=2 * N * HW * (C_in * C_in + C_in * S), transcendentals=0,
            bytes_accessed=(N * C_in * S * 2 + ops["WL_id"].size * 2
                            + N * C_in * HW * 4 + ops["UT_all"].size * 2
                            + N * C_in * HW * np.dtype(out_dtype).itemsize)),
    )(z, ops["WL_id"], x3d, ops["UT_all"])

    return out.reshape(N, C_in, H, W)


# ----------------------------------------------------------------------------
# Pure-JAX f32 reference (structured like the torch forward) for a sanity check
# ----------------------------------------------------------------------------
def ppm_reference(x, w_last, branch_wb, bins):
    N, C_in, H, W = x.shape
    HW = H * W
    xf = x.reshape(N, C_in, HW)
    hp = jax.lax.Precision.HIGHEST
    outs = [xf]
    for (Wf, bf), bin_sz in zip(branch_wb, bins):
        P = jnp.asarray(np.kron(adaptive_pool_matrix(bin_sz, H),
                                adaptive_pool_matrix(bin_sz, W)))   # (bin2, HW)
        U = jnp.asarray(np.kron(bilinear_matrix(H, bin_sz),
                                bilinear_matrix(W, bin_sz)))        # (HW, bin2)
        pooled = jnp.einsum('nck,pk->ncp', xf, P, precision=hp)
        y = jnp.maximum(jnp.einsum('oc,ncp->nop', Wf, pooled, precision=hp)
                        + bf[None], 0.0)
        outs.append(jnp.einsum('nop,kp->nok', y, U, precision=hp))
    cat = jnp.concatenate(outs, axis=1)
    out = jnp.einsum('oc,nck->nok', w_last, cat, precision=hp)
    return out.reshape(N, C_in, H, W)


# ----------------------------------------------------------------------------
# Deterministic parameter construction (emulating PPM.__init__ with phi=0)
# ----------------------------------------------------------------------------
def build_params(key, in_dim, out_dim, bins, eps=1e-5):
    branch_wb = []
    keys = jax.random.split(key, 5 * len(bins) + 1)
    for i in range(len(bins)):
        k_conv, k_g, k_b, k_m, k_v = keys[5 * i:5 * i + 5]
        conv_w = 0.1 * jax.random.normal(k_conv, (out_dim, in_dim), jnp.float32)
        gamma = 1.0 + 0.1 * jax.random.normal(k_g, (out_dim,), jnp.float32)
        beta = 0.1 * jax.random.normal(k_b, (out_dim,), jnp.float32)
        run_mean = 0.1 * jax.random.normal(k_m, (out_dim,), jnp.float32)
        run_var = 1.0 + 0.1 * jnp.abs(jax.random.normal(k_v, (out_dim,), jnp.float32))
        # Fold eval-mode BatchNorm into the 1x1 conv.
        scale = gamma / jnp.sqrt(run_var + eps)
        Wf = scale[:, None] * conv_w                           # (out_dim, in_dim)
        bf = (beta - scale * run_mean).reshape(out_dim, 1)     # (out_dim, 1)
        branch_wb.append((Wf, bf))
    # lastConv: Conv2d(2*in_dim, in_dim, kernel_size=1, bias=False)
    w_last = 0.1 * jax.random.normal(keys[-1], (in_dim, 2 * in_dim), jnp.float32)
    return w_last, branch_wb


if __name__ == "__main__":
    N, C_in, H, W = 2, 8, 16, 16
    bins = (1, 2, 3, 6)
    C_out = C_in // len(bins)   # concat channels = in_dim + len(bins)*out_dim = 2*in_dim

    key = jax.random.PRNGKey(0)
    kx, kp = jax.random.split(key)
    x = jax.random.normal(kx, (N, C_in, H, W), jnp.float32)
    w_last, branch_wb = build_params(kp, C_in, C_out, bins)

    ref = jax.block_until_ready(ppm_reference(x, w_last, branch_wb, bins))

    # Two tile configs: single-step reduction (T = H*W) and multi-step (T=128, K=2)
    # to exercise the resident-accumulator path.
    for lane_tile in (512, 128):
        ops = pack_ppm_operands(w_last, branch_wb, bins, H, W, lane_tile=lane_tile)
        fwd = jax.jit(partial(ppm_forward, ops=ops))
        out = jax.block_until_ready(fwd(x))
        assert out.shape == (N, C_in, H, W)
        assert out.dtype == jnp.bfloat16
        outf = np.asarray(out, dtype=np.float32)
        assert np.all(np.isfinite(outf))
        np.testing.assert_allclose(outf, np.asarray(ref), rtol=3e-2, atol=3e-2)

    print("KERNEL_OK")
</pallas_src>

<mosaic_0001>
module attributes {stable_mosaic.version = 11 : i64} {
  func.func @kernel(%arg0: i32, %arg1: i32, %arg2: memref<16x256xf32, #tpu.memory_space<vmem>>, %arg3: memref<256x50xbf16, #tpu.memory_space<vmem>>, %arg4: memref<16x50xf32, #tpu.memory_space<vmem>>) attributes {dimension_semantics = [#tpu.dimension_semantics<parallel>, #tpu.dimension_semantics<arbitrary>], iteration_bounds = array<i64: 1, 1>, scalar_prefetch = 0 : i64, scratch_operands = 0 : i64, tpu.core_type = #tpu.core_type<tc>, window_params = [{transform_indices = @transform_0, window_bounds = array<i64: 16, 256>}, {transform_indices = @transform_1, window_bounds = array<i64: 256, 50>}, {transform_indices = @transform_2, window_bounds = array<i64: 16, 50>}]} {
    %c0_i32 = arith.constant 0 : i32
    %0 = arith.cmpi eq, %arg1, %c0_i32 : i32
    %1 = arith.extui %0 : i1 to i32
    %c0_i32_0 = arith.constant 0 : i32
    %2 = arith.cmpi ne, %1, %c0_i32_0 : i32
    scf.if %2 {
      %cst_8 = arith.constant 0.000000e+00 : f32
      %10 = vector.broadcast %cst_8 : f32 to vector<16x50xf32>
      %c0_9 = arith.constant 0 : index
      %c0_10 = arith.constant 0 : index
      %11 = vector.load %arg4[%c0_9, %c0_10] : memref<16x50xf32, #tpu.memory_space<vmem>>, vector<16x50xf32>
      tpu.vector_store %arg4[%c0_9, %c0_10], %10 {strides = array<i32>} : memref<16x50xf32, #tpu.memory_space<vmem>>, vector<16x50xf32>,
    } else {
    }
    %c0 = arith.constant 0 : index
    %c0_1 = arith.constant 0 : index
    %3 = vector.load %arg2[%c0, %c0_1] : memref<16x256xf32, #tpu.memory_space<vmem>>, vector<16x256xf32>
    %c0_2 = arith.constant 0 : index
    %c0_3 = arith.constant 0 : index
    %4 = vector.load %arg4[%c0_2, %c0_3] : memref<16x50xf32, #tpu.memory_space<vmem>>, vector<16x50xf32>
    %5 = arith.truncf %3 : vector<16x256xf32> to vector<16x256xbf16>
    %c0_4 = arith.constant 0 : index
    %c0_5 = arith.constant 0 : index
    %6 = vector.load %arg3[%c0_4, %c0_5] : memref<256x50xbf16, #tpu.memory_space<vmem>>, vector<256x50xbf16>
    %cst = arith.constant dense<0.000000e+00> : vector<16x50xf32>
    %7 = tpu.matmul %5, %6, %cst {dimension_numbers = #tpu.dot_dimension_numbers<[1], [0], [0], [1], [0, 0, 1, 1], [], []>} : vector<16x256xbf16>, vector<256x50xbf16>, vector<16x50xf32> -> vector<16x50xf32>
    %8 = arith.addf %4, %7 : vector<16x50xf32>
    %c0_6 = arith.constant 0 : index
    %c0_7 = arith.constant 0 : index
    %9 = vector.load %arg4[%c0_6, %c0_7] : memref<16x50xf32, #tpu.memory_space<vmem>>, vector<16x50xf32>
    tpu.vector_store %arg4[%c0_6, %c0_7], %8 {strides = array<i32>} : memref<16x50xf32, #tpu.memory_space<vmem>>, vector<16x50xf32>,
    return
  }
  func.func @transform_0(%arg0: i32, %arg1: i32) -> (i32, i32) {
    %c0_i32 = arith.constant 0 : i32
    return %arg0, %arg1 : i32, i32
  }
  func.func @transform_1(%arg0: i32, %arg1: i32) -> (i32, i32) {
    %c0_i32 = arith.constant 0 : i32
    %c0_i32_0 = arith.constant 0 : i32
    return %arg1, %c0_i32 : i32, i32
  }
  func.func @transform_2(%arg0: i32, %arg1: i32) -> (i32, i32) {
    %c0_i32 = arith.constant 0 : i32
    %c0_i32_0 = arith.constant 0 : i32
    return %arg0, %c0_i32 : i32, i32
  }
}

module attributes {stable_mosaic.version = 11 : i64} {
  func.func @_epilogue_kernel(%arg0: i32, %arg1: memref<1x8x50xf32, #tpu.memory_space<vmem>>, %arg2: memref<8x8xbf16, #tpu.memory_space<vmem>>, %arg3: memref<8x1xf32, #tpu.memory_space<vmem>>, %arg4: memref<8x50xf32, #tpu.memory_space<vmem>>, %arg5: memref<8x8xbf16, #tpu.memory_space<vmem>>, %arg6: memref<1x8x50xbf16, #tpu.memory_space<vmem>>) attributes {dimension_semantics = [#tpu.dimension_semantics<parallel>], iteration_bounds = array<i64: 2>, scalar_prefetch = 0 : i64, scratch_operands = 0 : i64, tpu.core_type = #tpu.core_type<tc>, window_params = [{transform_indices = @transform_0, window_bounds = array<i64: 1, 8, 50>}, {pipeline_mode = #tpu.pipeline_mode<synchronous>, transform_indices = @transform_1, window_bounds = array<i64: 8, 8>}, {pipeline_mode = #tpu.pipeline_mode<synchronous>, transform_indices = @transform_2, window_bounds = array<i64: 8, 1>}, {pipeline_mode = #tpu.pipeline_mode<synchronous>, transform_indices = @transform_3, window_bounds = array<i64: 8, 50>}, {pipeline_mode = #tpu.pipeline_mode<synchronous>, transform_indices = @transform_4, window_bounds = array<i64: 8, 8>}, {transform_indices = @transform_5, window_bounds = array<i64: 1, 8, 50>}]} {
    %c0 = arith.constant 0 : index
    %c0_0 = arith.constant 0 : index
    %c0_1 = arith.constant 0 : index
    %0 = vector.load %arg1[%c0, %c0_0, %c0_1] : memref<1x8x50xf32, #tpu.memory_space<vmem>>, vector<1x8x50xf32>
    %1 = vector.shape_cast %0 : vector<1x8x50xf32> to vector<8x50xf32>
    %2 = arith.truncf %1 : vector<8x50xf32> to vector<8x50xbf16>
    %c0_2 = arith.constant 0 : index
    %c0_3 = arith.constant 0 : index
    %3 = vector.load %arg2[%c0_2, %c0_3] : memref<8x8xbf16, #tpu.memory_space<vmem>>, vector<8x8xbf16>
    %cst = arith.constant dense<0.000000e+00> : vector<8x50xf32>
    %4 = tpu.matmul %3, %2, %cst {dimension_numbers = #tpu.dot_dimension_numbers<[1], [0], [0], [1], [0, 0, 1, 1], [], []>} : vector<8x8xbf16>, vector<8x50xbf16>, vector<8x50xf32> -> vector<8x50xf32>
    %c0_4 = arith.constant 0 : index
    %c0_5 = arith.constant 0 : index
    %5 = vector.load %arg3[%c0_4, %c0_5] : memref<8x1xf32, #tpu.memory_space<vmem>>, vector<8x1xf32>
    %6 = vector.broadcast %5 : vector<8x1xf32> to vector<8x50xf32>
    %7 = arith.addf %4, %6 : vector<8x50xf32>
    %cst_6 = arith.constant 0.000000e+00 : f32
    %8 = vector.broadcast %cst_6 : f32 to vector<8x50xf32>
    %9 = arith.maximumf %7, %8 : vector<8x50xf32>
    %c0_7 = arith.constant 0 : index
    %c0_8 = arith.constant 0 : index
    %10 = vector.load %arg4[%c0_7, %c0_8] : memref<8x50xf32, #tpu.memory_space<vmem>>, vector<8x50xf32>
    %11 = arith.mulf %9, %10 : vector<8x50xf32>
    %c0_9 = arith.constant 0 : index
    %c0_10 = arith.constant 0 : index
    %12 = vector.load %arg5[%c0_9, %c0_10] : memref<8x8xbf16, #tpu.memory_space<vmem>>, vector<8x8xbf16>
    %13 = arith.truncf %11 : vector<8x50xf32> to vector<8x50xbf16>
    %cst_11 = arith.constant dense<0.000000e+00> : vector<8x50xf32>
    %14 = tpu.matmul %12, %13, %cst_11 {dimension_numbers = #tpu.dot_dimension_numbers<[1], [0], [0], [1], [0, 0, 1, 1], [], []>} : vector<8x8xbf16>, vector<8x50xbf16>, vector<8x50xf32> -> vector<8x50xf32>
    %15 = arith.truncf %14 : vector<8x50xf32> to vector<8x50xbf16>
    %c0_12 = arith.constant 0 : index
    %c0_13 = arith.constant 0 : index
    %c0_14 = arith.constant 0 : index
    %16 = vector.load %arg6[%c0_12, %c0_13, %c0_14] : memref<1x8x50xbf16, #tpu.memory_space<vmem>>, vector<1x8x50xbf16>
    %17 = vector.shape_cast %16 : vector<1x8x50xbf16> to vector<8x50xbf16>
    %18 = vector.shape_cast %15 : vector<8x50xbf16> to vector<1x8x50xbf16>
    tpu.vector_store %arg6[%c0_12, %c0_13, %c0_14], %18 {strides = array<i32>} : memref<1x8x50xbf16, #tpu.memory_space<vmem>>, vector<1x8x50xbf16>,
    return
  }
  func.func @transform_0(%arg0: i32) -> (i32, i32, i32) {
    %c0_i32 = arith.constant 0 : i32
    %c0_i32_0 = arith.constant 0 : i32
    %c0_i32_1 = arith.constant 0 : i32
    return %arg0, %c0_i32, %c0_i32_0 : i32, i32, i32
  }
  func.func @transform_1(%arg0: i32) -> (i32, i32) {
    %c0_i32 = arith.constant 0 : i32
    %c0_i32_0 = arith.constant 0 : i32
    %c0_i32_1 = arith.constant 0 : i32
    return %c0_i32, %c0_i32_0 : i32, i32
  }
  func.func @transform_2(%arg0: i32) -> (i32, i32) {
    %c0_i32 = arith.constant 0 : i32
    %c0_i32_0 = arith.constant 0 : i32
    %c0_i32_1 = arith.constant 0 : i32
    return %c0_i32, %c0_i32_0 : i32, i32
  }
  func.func @transform_3(%arg0: i32) -> (i32, i32) {
    %c0_i32 = arith.constant 0 : i32
    %c0_i32_0 = arith.constant 0 : i32
    %c0_i32_1 = arith.constant 0 : i32
    return %c0_i32, %c0_i32_0 : i32, i32
  }
  func.func @transform_4(%arg0: i32) -> (i32, i32) {
    %c0_i32 = arith.constant 0 : i32
    %c0_i32_0 = arith.constant 0 : i32
    %c0_i32_1 = arith.constant 0 : i32
    return %c0_i32, %c0_i32_0 : i32, i32
  }
  func.func @transform_5(%arg0: i32) -> (i32, i32, i32) {
    %c0_i32 = arith.constant 0 : i32
    %c0_i32_0 = arith.constant 0 : i32
    %c0_i32_1 = arith.constant 0 : i32
    return %arg0, %c0_i32, %c0_i32_0 : i32, i32, i32
  }
}

module attributes {stable_mosaic.version = 11 : i64} {
  func.func @_apply_kernel(%arg0: i32, %arg1: i32, %arg2: memref<1x8x50xbf16, #tpu.memory_space<vmem>>, %arg3: memref<8x8xbf16, #tpu.memory_space<vmem>>, %arg4: memref<1x8x256xf32, #tpu.memory_space<vmem>>, %arg5: memref<50x256xbf16, #tpu.memory_space<vmem>>, %arg6: memref<1x8x256xbf16, #tpu.memory_space<vmem>>) attributes {dimension_semantics = [#tpu.dimension_semantics<parallel>, #tpu.dimension_semantics<parallel>], iteration_bounds = array<i64: 2, 1>, scalar_prefetch = 0 : i64, scratch_operands = 0 : i64, tpu.core_type = #tpu.core_type<tc>, window_params = [{transform_indices = @transform_0, window_bounds = array<i64: 1, 8, 50>}, {pipeline_mode = #tpu.pipeline_mode<synchronous>, transform_indices = @transform_1, window_bounds = array<i64: 8, 8>}, {transform_indices = @transform_2, window_bounds = array<i64: 1, 8, 256>}, {transform_indices = @transform_3, window_bounds = array<i64: 50, 256>}, {transform_indices = @transform_4, window_bounds = array<i64: 1, 8, 256>}]} {
    %c0 = arith.constant 0 : index
    %c0_0 = arith.constant 0 : index
    %c0_1 = arith.constant 0 : index
    %0 = vector.load %arg4[%c0, %c0_0, %c0_1] : memref<1x8x256xf32, #tpu.memory_space<vmem>>, vector<1x8x256xf32>
    %1 = vector.shape_cast %0 : vector<1x8x256xf32> to vector<8x256xf32>
    %2 = arith.truncf %1 : vector<8x256xf32> to vector<8x256xbf16>
    %c0_2 = arith.constant 0 : index
    %c0_3 = arith.constant 0 : index
    %3 = vector.load %arg3[%c0_2, %c0_3] : memref<8x8xbf16, #tpu.memory_space<vmem>>, vector<8x8xbf16>
    %cst = arith.constant dense<0.000000e+00> : vector<8x256xf32>
    %4 = tpu.matmul %3, %2, %cst {dimension_numbers = #tpu.dot_dimension_numbers<[1], [0], [0], [1], [0, 0, 1, 1], [], []>} : vector<8x8xbf16>, vector<8x256xbf16>, vector<8x256xf32> -> vector<8x256xf32>
    %c0_4 = arith.constant 0 : index
    %c0_5 = arith.constant 0 : index
    %c0_6 = arith.constant 0 : index
    %5 = vector.load %arg2[%c0_4, %c0_5, %c0_6] : memref<1x8x50xbf16, #tpu.memory_space<vmem>>, vector<1x8x50xbf16>
    %6 = vector.shape_cast %5 : vector<1x8x50xbf16> to vector<8x50xbf16>
    %c0_7 = arith.constant 0 : index
    %c0_8 = arith.constant 0 : index
    %7 = vector.load %arg5[%c0_7, %c0_8] : memref<50x256xbf16, #tpu.memory_space<vmem>>, vector<50x256xbf16>
    %cst_9 = arith.constant dense<0.000000e+00> : vector<8x256xf32>
    %8 = tpu.matmul %6, %7, %cst_9 {dimension_numbers = #tpu.dot_dimension_numbers<[1], [0], [0], [1], [0, 0, 1, 1], [], []>} : vector<8x50xbf16>, vector<50x256xbf16>, vector<8x256xf32> -> vector<8x256xf32>
    %9 = arith.addf %4, %8 : vector<8x256xf32>
    %10 = arith.truncf %9 : vector<8x256xf32> to vector<8x256xbf16>
    %c0_10 = arith.constant 0 : index
    %c0_11 = arith.constant 0 : index
    %c0_12 = arith.constant 0 : index
    %11 = vector.load %arg6[%c0_10, %c0_11, %c0_12] : memref<1x8x256xbf16, #tpu.memory_space<vmem>>, vector<1x8x256xbf16>
    %12 = vector.shape_cast %11 : vector<1x8x256xbf16> to vector<8x256xbf16>
    %13 = vector.shape_cast %10 : vector<8x256xbf16> to vector<1x8x256xbf16>
    tpu.vector_store %arg6[%c0_10, %c0_11, %c0_12], %13 {strides = array<i32>} : memref<1x8x256xbf16, #tpu.memory_space<vmem>>, vector<1x8x256xbf16>,
    return
  }
  func.func @transform_0(%arg0: i32, %arg1: i32) -> (i32, i32, i32) {
    %c0_i32 = arith.constant 0 : i32
    %c0_i32_0 = arith.constant 0 : i32
    %c0_i32_1 = arith.constant 0 : i32
    return %arg0, %c0_i32, %c0_i32_0 : i32, i32, i32
  }
  func.func @transform_1(%arg0: i32, %arg1: i32) -> (i32, i32) {
    %c0_i32 = arith.constant 0 : i32
    %c0_i32_0 = arith.constant 0 : i32
    %c0_i32_1 = arith.constant 0 : i32
    return %c0_i32, %c0_i32_0 : i32, i32
  }
  func.func @transform_2(%arg0: i32, %arg1: i32) -> (i32, i32, i32) {
    %c0_i32 = arith.constant 0 : i32
    %c0_i32_0 = arith.constant 0 : i32
    return %arg0, %c0_i32, %arg1 : i32, i32, i32
  }
  func.func @transform_3(%arg0: i32, %arg1: i32) -> (i32, i32) {
    %c0_i32 = arith.constant 0 : i32
    %c0_i32_0 = arith.constant 0 : i32
    return %c0_i32, %arg1 : i32, i32
  }
  func.func @transform_4(%arg0: i32, %arg1: i32) -> (i32, i32, i32) {
    %c0_i32 = arith.constant 0 : i32
    %c0_i32_0 = arith.constant 0 : i32
    return %arg0, %c0_i32, %arg1 : i32, i32, i32
  }
}

</mosaic_0001>

<bundles_post_ra>
// kernel: ppm_forward.3
= control target key start
LH: loop header
LB: loop body
LE: loop exit
PB: predicated region body
PF: predicated region fallthrough
CT: control target
= control target key end

     0   :  { %vm15_vm0 = vcmask 408576   ;;  %v272_v22 = vmov 0.0   ;;  %s366_s1 = inlined_call_operand.vmem [shape: bf16[256,50], index: 1, kind: input, shape index: {}]   ;;  %s367_s0 = inlined_call_operand.vmem [shape: f32[16,256], index: 0, kind: input, shape index: {}]   ;;  %s368_s2 = inlined_call_operand.vmem [shape: f32[16,50], index: 2, kind: output, shape index: {}]  }
   0x1   :  { %v262_v0 = vld [vmem:[%s366_s1 + $0x38] sm:$0xff]  ;;  %v261_v2 = vld [vmem:[%s366_s1 + $0x30] sm:$0xff]  ;;  %v260_v4 = vld [vmem:[%s366_s1 + $0x28] sm:$0xff]  ;;  %16 = vst.msk [vmem:[%s368_s2] sm:$0xff] %vm15_vm0, %v272_v22 }
   0x2   :  { %v270_v1 = vld [vmem:[%s366_s1 + $0x78] sm:$0xff]  ;;  %154 = vmatpush.bf16.msra.mxu0 %v262_v0  ;;  %v269_v3 = vld [vmem:[%s366_s1 + $0x70] sm:$0xff]  ;;  %v268_v5 = vld [vmem:[%s366_s1 + $0x68] sm:$0xff]  ;;  %17 = vst.msk [vmem:[%s368_s2 + $0x8] sm:$0xff] %vm15_vm0, %v272_v22 }
   0x3   :  { %168 = vmatpush.bf16.msra.mxu1 %v270_v1  ;;  %v259_v6 = vld [vmem:[%s366_s1 + $0x20] sm:$0xff]  ;;  %v258_v8 = vld [vmem:[%s366_s1 + $0x18] sm:$0xff]  ;;  %v257_v10 = vld [vmem:[%s366_s1 + $0x10] sm:$0xff] }
   0x4   :  { %v267_v7 = vld [vmem:[%s366_s1 + $0x60] sm:$0xff]  ;;  %v266_v9 = vld [vmem:[%s366_s1 + $0x58] sm:$0xff]  ;;  %v265_v11 = vld [vmem:[%s366_s1 + $0x50] sm:$0xff] }
   0x5   :  { %v256_v12 = vld [vmem:[%s366_s1 + $0x8] sm:$0xff]  ;;  %v255_v14 = vld [vmem:[%s366_s1] sm:$0xff]  ;;  %v20_v17 = vld [vmem:[%s367_s0 + $0x10] sm:$0xff] }
   0x6   :  { %155 = vmatpush.bf16.msra.mxu0 %v261_v2  ;;  %v264_v13 = vld [vmem:[%s366_s1 + $0x48] sm:$0xff]  ;;  %v263_v15 = vld [vmem:[%s366_s1 + $0x40] sm:$0xff]  ;;  %v21_v19 = vld [vmem:[%s367_s0 + $0x18] sm:$0xff] }
   0x7   :  { %169 = vmatpush.bf16.msra.mxu1 %v269_v3  ;;  %v18_v16 = vld [vmem:[%s367_s0] sm:$0xff]  ;;  %v19_v18 = vld [vmem:[%s367_s0 + $0x8] sm:$0xff] }
   0x8   :  { %v24_v20 = vpack.c.bf16 %v20_v17, %v18_v16  ;;  %v25_v21 = vpack.c.bf16 %v21_v19, %v19_v18  ;;  %v22_v24 = vld [vmem:[%s368_s2] sm:$0xff] }
   0x9   :  { %v23_v29 = vld [vmem:[%s368_s2 + $0x8] sm:$0xff] }
   0xa   :  { %156 = vmatpush.bf16.msra.mxu0 %v260_v4 }
   0xb   :  { %170 = vmatpush.bf16.msra.mxu1 %v268_v5 }
   0xe   :  { %157 = vmatpush.bf16.msra.mxu0 %v259_v6 }
   0xf   :  { %171 = vmatpush.bf16.msra.mxu1 %v267_v7 }
  0x12   :  { %158 = vmatpush.bf16.msra.mxu0 %v258_v8 }
  0x13   :  { %172 = vmatpush.bf16.msra.mxu1 %v266_v9 }
  0x16   :  { %159 = vmatpush.bf16.msra.mxu0 %v257_v10 }
  0x17   :  { %173 = vmatpush.bf16.msra.mxu1 %v265_v11 }
  0x1a   :  { %160 = vmatpush.bf16.msra.mxu0 %v256_v12 }
  0x1b   :  { %174 = vmatpush.bf16.msra.mxu1 %v264_v13 }
  0x1e   :  { %161 = vmatpush.bf16.msra.mxu0 %v255_v14 }
  0x1f   :  { %175 = vmatpush.bf16.msra.mxu1 %v263_v15 }
  0x21   :  { %162 = vmatmul.bf16.vlgmr.msra.gmra.mxu0 %v24_v20 }
  0x22   :  { %176 = vmatmul.bf16.vlgmr.msra.gmra.mxu1 %v25_v21 }
  0x9e   :  { %v163_v23 = vpop.f32.mrf.mxu0 }
  0x9f   :  { %v177_v25 = vpop.f32.mrf.mxu1 }
  0xa0   :  { %v178_v26 = vadd.f32 %v177_v25, %v163_v23 }
  0xa2   :  { %v182_v27 = vadd.f32 %v178_v26, %v22_v24 }
  0xa4   :  { %185 = vst.msk [vmem:[%s368_s2] sm:$0xff] %vm15_vm0, %v182_v27 }
  0xa6   :  { %v165_v28 = vpop.f32.mrf.mxu0 }
  0xa7   :  { %v179_v30 = vpop.f32.mrf.mxu1 }
  0xa8   :  { %v180_v31 = vadd.f32 %v179_v30, %v165_v28 }
  0xaa   :  { %v183_v32 = vadd.f32 %v180_v31, %v23_v29 }
  0xac   :  { %186 = vst.msk [vmem:[%s368_s2 + $0x8] sm:$0xff] %vm15_vm0, %v183_v32 }

// kernel: ppm_forward.4
= control target key start
LH: loop header
LB: loop body
LE: loop exit
PB: predicated region body
PF: predicated region fallthrough
CT: control target
= control target key end

     0   :  { %s391_s18 = smov 0   ;;  %s420_s0 = inlined_call_operand.vmem [shape: f32[2,8,50], index: 0, kind: input, shape index: {}]   ;;  %s421_s1 = inlined_call_operand.vmem [shape: bf16[8,8], index: 1, kind: input, shape index: {}]   ;;  %s422_s2 = inlined_call_operand.vmem [shape: f32[8,1], index: 2, kind: input, shape index: {}]   ;;  %s423_s3 = inlined_call_operand.vmem [shape: f32[8,50], index: 3, kind: input, shape index: {}]   ;;  %s424_s4 = inlined_call_operand.vmem [shape: bf16[8,8], index: 4, kind: input, shape index: {}]   ;;  %s425_s5 = inlined_call_operand.vmem [shape: bf16[2,8,50], index: 5, kind: output, shape index: {}]  }
   0x1 LB: > { %s331_s19 = sadd.s32 4294967295, %s358_s18   ;;  %p335_p0 = scmp.ge.s32.totalorder %s358_s18, 1  ;;  %s358_s18 = sphi %s391_s18, %s15_s18  }
   0x2   : > { %p186_p1 = scmp.lt.s32.totalorder %s358_s18, 3 }
   0x4   : > { %p187_p2 = pnand %p335_p0, %p186_p1 }
   0x5   : > { %p212_p3 = scmp.lt.s32.totalorder (!%p187_p2), %s331_s19, 1 }
   0x6   : > { %190 = sbr.rel (%p187_p2) target bundleno = 293 (0x125), region = 40 }
   0xb   : > { %v360_v0 = vmov 0   ;;  %v224_v1 = vld [vmem:[%s422_s2] sm:$0xff]  ;;  %s427_s19 = smov (!%p212_p3, %s331_s19), 1  ;;  %vm234_vm0 = vcmask 1043456   ;;  %vm230_vm1 = vcmask 64512   ;;  %vm276_vm2 = vcmask 404480  }
   0xc   : > { %351 = vset.pattern.permute.xlu0 %v360_v0  ;;  %s336_s22 = sshll.u32 %s427_s19, 3  ;;  %v223_v5 = vld [vmem:[%s421_s1] sm:$0xf]  ;;  %s337_s7 = sshll.u32 %s427_s19, 2 }
   0xd   : > { %227 = vperm.xlu0 %351, %v224_v1   ;;  %s215_s25 = scalar_lea.vmem %s420_s0, %s336_s22  ;;  %v252_v9 = vld [vmem:[%s423_s3] sm:$0xff]  ;;  %s219_s10 = scalar_lea.vmem %s425_s5, %s337_s7 }
   0xe   : > { %v221_v2 = vld [vmem:[%s215_s25] sm:$0xff] }
   0xf   : > { %v222_v3 = vpack.c.bf16 %v221_v2, %v221_v2  ;;  %v254_v15 = vld [vmem:[%s424_s4] sm:$0xf] }
  0x11   : > { %v236_v4 = vsel %vm234_vm0, %v222_v3, 0 }
  0x12   : > { %245 = vmatpush.bf16.msra.mxu0 %v236_v4 }
  0x15   : > { %338 = vmatmul.msk.bf16.vlgmr.msra.gmra.mxu0 %vm230_vm1, %v223_v5 }
  0x7f   : > { %v228_v6 = vpop.permute.xlu0 %227 }
  0x92   : > { %v247_v7 = vpop.f32.mrf.mxu0 }
  0x93   : > { %v248_v8 = vadd.f32 %v247_v7, %v228_v6 }
  0x95   : > { %v251_v10 = vmax.f32 %v248_v8, 0.0 }
  0x97   : > { %v253_v11 = vmul.f32 %v252_v9, %v251_v10 }
  0x99   : > { %v255_v12 = vpack.c.bf16 %v253_v11, %v253_v11 }
  0x9a   : > { %v249_v13 = vpop.f32.mrf.mxu0 }
  0x9b   : > { %v260_v14 = vsel %vm234_vm0, %v255_v12, 0 }
  0x9c   : > { %269 = vmatpush.bf16.msra.mxu1 %v260_v14 }
  0x9f   : > { %339 = vmatmul.msk.bf16.vlgmr.msra.gmra.mxu1 %vm230_vm1, %v254_v15 }
 0x11c   : > { %v271_v16 = vpop.f32.mrf.mxu1 }
 0x11d   : > { %v275_v17 = vpack.c.bf16 %v271_v16, %v271_v16 }
 0x11f   : > { %277 = vst.msk [vmem:[%s219_s10] sm:$0xf] %vm276_vm2, %v275_v17 }
 0x124   : > { %v273_v18 = vpop.f32.mrf.mxu1 }
 0x125 PF: > { %s15_s18 = sadd.s32 1, %s358_s18  }
 0x126   : > { %p12_p4 = scmp.ge.s32.totalorder %s15_s18, 4  }
 0x128   :  { %14 = sbr.rel (!%p12_p4) target bundleno = 1 (0x1), region = 70 }

// kernel: ppm_forward.5
= control target key start
LH: loop header
LB: loop body
LE: loop exit
PB: predicated region body
PF: predicated region fallthrough
CT: control target
= control target key end

     0   :  { %s637_s15 = smov 0   ;;  %s639_s16 = smov 0   ;;  %s720_s0 = inlined_call_operand.vmem [shape: bf16[2,8,50], index: 0, kind: input, shape index: {}]   ;;  %s721_s1 = inlined_call_operand.vmem [shape: bf16[8,8], index: 1, kind: input, shape index: {}]   ;;  %s722_s2 = inlined_call_operand.vmem [shape: f32[2,8,256], index: 2, kind: input, shape index: {}]   ;;  %s723_s3 = inlined_call_operand.vmem [shape: bf16[50,256], index: 3, kind: input, shape index: {}]   ;;  %s724_s4 = inlined_call_operand.vmem [shape: bf16[2,8,256], index: 4, kind: output, shape index: {}]  }
   0x1   :  { %s641_s17 = smov 0  }
   0x2 LB: > { %s26_s18 = sadd.s32 1, %s606_s16  ;;  %p520_p0 = scmp.ge.s32.totalorder %s610_s17, 1  ;;  %s610_s17 = sphi %s641_s17, %s14_s17   ;;  %s606_s16 = sphi %s639_s16, %s726_s16   ;;  %s602_s15 = sphi %s637_s15, %s725_s15  }
   0x3   : > { %p28_p1 = scmp.ge.s32.totalorder %s26_s18, 2  ;;  %p203_p2 = scmp.lt.s32.totalorder %s610_s17, 3 }
   0x5   : > { %s728_s18 = smov (%p28_p1, %s26_s18), 0  ;;  %p204_p3 = pnand %p520_p0, %p203_p2 }
   0x6   : > { %p246_p4 = scmp.lt.s32.totalorder (!%p204_p3), %s602_s15, 1 }
   0x7   : > { %207 = sbr.rel (%p204_p3) target bundleno = 167 (0xa7), region = 36 }
   0xc   : > { %v289_v0 = vld [vmem:[%s723_s3 + $0x30] sm:$0x11]  ;;  %vm329_vm0 = vcmask 1040384   ;;  %v544_v3 = vld [vmem:[%s723_s3 + $0x20] sm:$0xf]  ;;  %s730_s15 = smov (!%p246_p4, %s602_s15), 1 }
   0xd   : > { %v309_v1 = vunpack.c.l.b16 %v289_v0  ;;  %v310_v2 = vunpack.c.h.b16 %v289_v0  ;;  %v563_v6 = vld [vmem:[%s723_s3 + $0x24] sm:$0xf0]  ;;  %v562_v7 = vld [vmem:[%s723_s3 + $0x24] sm:$0xf]  ;;  %v546_v8 = vld [vmem:[%s723_s3 + $0x28] sm:$0xf0] }
   0xe   : > { %s556_s29 = sshll.u32 %s730_s15, 4  ;;  %v545_v11 = vor.u32 %v563_v6, %v544_v3  ;;  %v549_v12 = vor.u32 %v562_v7, %v546_v8  ;;  %vm366_vm1 = vcmask 1043456   ;;  %v536_v17 = vld [vmem:[%s723_s3 + $0x10] sm:$0xf]  ;;  %v561_v18 = vld [vmem:[%s723_s3 + $0x14] sm:$0xf0] }
   0xf   : > { %v317_v4 = vpack.c.b16 %v309_v1, %v309_v1  ;;  %v318_v5 = vpack.c.b16 %v310_v2, %v310_v2  ;;  %s258_s6 = scalar_lea.vmem %s722_s2, %s556_s29  ;;  %v560_v19 = vld [vmem:[%s723_s3 + $0x14] sm:$0xf]  ;;  %v538_v20 = vld [vmem:[%s723_s3 + $0x18] sm:$0xf0]  ;;  %v281_v23 = vld [vmem:[%s721_s1] sm:$0xf]  ;;  %v537_v24 = vor.u32 %v561_v18, %v536_v17 }
  0x10   : > { %v277_v13 = vld [vmem:[%s258_s6] sm:$0xff]  ;;  %v278_v14 = vld [vmem:[%s258_s6 + $0x8] sm:$0xff]  ;;  %vm362_vm2 = vcmask 64512   ;;  %v541_v25 = vor.u32 %v560_v19, %v538_v20  ;;  %s521_s29 = sshll.u32 %s730_s15, 2  ;;  %vm325_vm3 = vcmask 408576   ;;  %s557_s7 = sshll.u32 %s730_s15, 3 }
  0x11   : > { %v331_v9 = vsel %vm329_vm0, %v317_v4, 0  ;;  %v334_v10 = vsel %vm329_vm0, %v318_v5, 0  ;;  %v279_v15 = vpack.c.bf16 %v277_v13, %v277_v13  ;;  %v280_v16 = vpack.c.bf16 %v278_v14, %v278_v14  ;;  %v528_v26 = vld [vmem:[%s723_s3] sm:$0xf]  ;;  %v559_v27 = vld [vmem:[%s723_s3 + $0x4] sm:$0xf0]  ;;  %s249_s6 = scalar_lea.vmem %s720_s0, %s521_s29  ;;  %s274_s10 = scalar_lea.vmem %s724_s4, %s557_s7 }
  0x12   : > { %340 = vmatpush.bf16.msra.mxu0 %v331_v9  ;;  %353 = vmatpush.bf16.msra.mxu1 %v334_v10  ;;  %v558_v28 = vld [vmem:[%s723_s3 + $0x4] sm:$0xf]  ;;  %v530_v29 = vld [vmem:[%s723_s3 + $0x8] sm:$0xf0]  ;;  %v529_v30 = vor.u32 %v559_v27, %v528_v26  ;;  %v282_v32 = vld [vmem:[%s249_s6] sm:$0xf] }
  0x13   : > { %v368_v21 = vsel %vm366_vm1, %v279_v15, 0  ;;  %v371_v22 = vsel %vm366_vm1, %v280_v16, 0  ;;  %v533_v31 = vor.u32 %v558_v28, %v530_v29 }
  0x14   : > { %380 = vmatpush.bf16.msra.mxu2 %v368_v21  ;;  %393 = vmatpush.bf16.msra.mxu3 %v371_v22 }
  0x16   : > { %341 = vmatpush.bf16.msra.mxu0 %v545_v11  ;;  %354 = vmatpush.bf16.msra.mxu1 %v549_v12 }
  0x17   : > { %552 = vmatmul.msk.bf16.vlgmr.msra.gmra.mxu2 %vm362_vm2, %v281_v23  ;;  %553 = vmatmul.msk.bf16.vlgmr.msra.gmra.mxu3 %vm362_vm2, %v281_v23 }
  0x1a   : > { %342 = vmatpush.bf16.msra.mxu0 %v537_v24  ;;  %355 = vmatpush.bf16.msra.mxu1 %v541_v25 }
  0x1e   : > { %343 = vmatpush.bf16.msra.mxu0 %v529_v30  ;;  %356 = vmatpush.bf16.msra.mxu1 %v533_v31 }
  0x21   : > { %550 = vmatmul.msk.bf16.vlgmr.msra.gmra.mxu0 %vm325_vm3, %v282_v32  ;;  %551 = vmatmul.msk.bf16.vlgmr.msra.gmra.mxu1 %vm325_vm3, %v282_v32 }
  0x9a   : > { %v382_v33 = vpop.f32.mrf.mxu2  ;;  %v395_v34 = vpop.f32.mrf.mxu3 }
  0x9e   : > { %v345_v35 = vpop.f32.mrf.mxu0  ;;  %v358_v36 = vpop.f32.mrf.mxu1 }
  0x9f   : > { %v383_v37 = vadd.f32 %v382_v33, %v345_v35  ;;  %v396_v38 = vadd.f32 %v395_v34, %v358_v36 }
  0xa1   : > { %v399_v39 = vpack.c.bf16 %v396_v38, %v383_v37 }
  0xa2   : > { %v384_v40 = vpop.f32.mrf.mxu2  ;;  %v397_v41 = vpop.f32.mrf.mxu3 }
  0xa3   : > { %400 = vst [vmem:[%s274_s10] sm:$0xff] %v399_v39 }
  0xa6   : > { %v347_v42 = vpop.f32.mrf.mxu0  ;;  %v360_v43 = vpop.f32.mrf.mxu1 }
  0xa7 PF: > { %s14_s17 = sadd.s32 1, %s610_s17   ;;  %s725_s15 = smov %s606_s16 }
  0xa8   : > { %p11_p5 = scmp.ge.s32.totalorder %s14_s17, 4   ;;  %s726_s16 = smov %s728_s18 }
  0xaa   :  { %13 = sbr.rel (!%p11_p5) target bundleno = 2 (0x2), region = 72 }

</bundles_post_ra>
